<compile_context>
chip_gen: v7x
topology: tpu7x:2x2x1
jax: 0.10.0
libtpu: 0.0.40
codegen_flags: <defaults>
</compile_context>

<pallas_src>
import functools

import jax
import jax.numpy as jnp
import numpy as np
from jax.experimental import pallas as pl
from jax.experimental.pallas import tpu as pltpu


# ------------------------------ Pallas kernel ------------------------------ #

def _fft_stack_kernel(*refs, dilations, has_fc):
    """Runs len(dilations) FFT_Blocks back-to-back on one batch element.

    Per block (identical math to PyTorch FFT_Block.forward):
        z = conv_2x1_LR(h) + conv_2x1_VLR(cond)     # 2 taps each -> 4 matmuls
        h = relu(conv_1x1_last(relu(z)))
    The carried activation `h` never leaves the chip between layers.
    """
    if has_fc:
        (x_ref, c_ref, w0_ref, w1_ref, v0_ref, v1_ref, b_ref,
         wl_ref, bl_ref, fcw_ref, fcb_ref, o_ref) = refs
    else:
        (x_ref, c_ref, w0_ref, w1_ref, v0_ref, v1_ref, b_ref,
         wl_ref, bl_ref, o_ref) = refs

    h = x_ref[0]                      # (L0, C)  current activation
    c = c_ref[0]                      # (L0, Cc) max-padded conditioning
    length = h.shape[0]
    off = 0                           # h[i] aligns with c[off + i]

    for l, d in enumerate(dilations):
        l_out = length - d
        # kernel-size-2 dilated convs as shifted matmuls (tap 0 / tap 1).
        z = (jnp.dot(h[0:l_out, :], w0_ref[l],
                     preferred_element_type=jnp.float32)
             + jnp.dot(h[d:d + l_out, :], w1_ref[l],
                       preferred_element_type=jnp.float32)
             + jnp.dot(c[off:off + l_out, :], v0_ref[l],
                       preferred_element_type=jnp.float32)
             + jnp.dot(c[off + d:off + d + l_out, :], v1_ref[l],
                       preferred_element_type=jnp.float32)
             + b_ref[l])              # b_lr + b_vlr folded in the wrapper
        z = jnp.maximum(z, 0.0)
        h = jnp.maximum(jnp.dot(z, wl_ref[l],
                                preferred_element_type=jnp.float32)
                        + bl_ref[l], 0.0)
        length = l_out
        off += d

    if has_fc:
        # FFTNet drops the last time step, then applies the (lane-padded) fc.
        h = (jnp.dot(h[0:length - 1, :], fcw_ref[...],
                     preferred_element_type=jnp.float32) + fcb_ref[...])
    o_ref[0, :, :] = h


def _run_fft_stack(h0, cond_pad, stacked, dilations, fc_w=None, fc_b=None):
    """Single pallas_call running the whole block stack for every batch elem."""
    B, L0, C = h0.shape
    Bc, Lc, Cc = cond_pad.shape
    assert (Bc, Lc) == (B, L0), (cond_pad.shape, h0.shape)
    has_fc = fc_w is not None
    L_f = L0 - sum(dilations) - (1 if has_fc else 0)
    C_out = fc_w.shape[1] if has_fc else stacked["wl"].shape[2]

    kernel = functools.partial(
        _fft_stack_kernel,
        dilations=tuple(int(d) for d in dilations),
        has_fc=has_fc)
    const3 = lambda b: (0, 0, 0)

    in_specs = [
        pl.BlockSpec((1, L0, C), lambda b: (b, 0, 0)),      # h0
        pl.BlockSpec((1, L0, Cc), lambda b: (b, 0, 0)),     # cond (max-padded)
        pl.BlockSpec(stacked["w0"].shape, const3),          # (nl, C, C)
        pl.BlockSpec(stacked["w1"].shape, const3),          # (nl, C, C)
        pl.BlockSpec(stacked["v0"].shape, const3),          # (nl, Cc, C)
        pl.BlockSpec(stacked["v1"].shape, const3),          # (nl, Cc, C)
        pl.BlockSpec(stacked["b"].shape, const3),           # (nl, 1, C) folded
        pl.BlockSpec(stacked["wl"].shape, const3),          # (nl, C, C or 128)
        pl.BlockSpec(stacked["bl"].shape, const3),
    ]
    args = [h0, cond_pad, stacked["w0"], stacked["w1"], stacked["v0"],
            stacked["v1"], stacked["b"], stacked["wl"], stacked["bl"]]
    if has_fc:
        in_specs += [pl.BlockSpec(fc_w.shape, lambda b: (0, 0)),
                     pl.BlockSpec(fc_b.shape, lambda b: (0, 0))]
        args += [fc_w, fc_b]

    return pl.pallas_call(
        kernel,
        out_shape=jax.ShapeDtypeStruct((B, L_f, C_out), jnp.float32),
        grid=(B,),
        in_specs=in_specs,
        out_specs=pl.BlockSpec((1, L_f, C_out), lambda b: (b, 0, 0)),
        compiler_params=pltpu.CompilerParams(
            dimension_semantics=("parallel",)),   # batch across v7x's 2 TCs
    )(*args)


# ------------------------------ wrappers ----------------------------------- #

def _pad_last(a, mult=128):
    """Zero-pad the last dim up to a multiple of `mult` (lane-dense stores)."""
    c = a.shape[-1]
    cp = -(-c // mult) * mult
    if cp == c:
        return a
    pad = [(0, 0)] * (a.ndim - 1) + [(0, cp - c)]
    return jnp.pad(a, pad)


def fft_block(x, cond, p, recep_sz):
    """PyTorch FFT_Block.forward equivalent (time-major layout).

    x: (B, L, io_ch), cond: (B, L, cond_dim) -> (B, L - recep_sz//2, io_ch).
    Conv weights are stored pre-transposed as (in_ch, out_ch) per tap, i.e.
    w{0,1}_lr = W_torch[:, :, tap].T.
    """
    B, L, C = x.shape
    d = recep_sz // 2
    stacked = dict(
        w0=p["w0_lr"][None], w1=p["w1_lr"][None],
        v0=p["w0_vlr"][None], v1=p["w1_vlr"][None],
        b=(p["b_lr"] + p["b_vlr"])[None],            # folded bias
        wl=_pad_last(p["w_last"])[None],             # lane-dense output store
        bl=_pad_last(p["b_last"])[None])
    out = _run_fft_stack(x, cond, stacked, (d,))
    return out[:, :, :C]


def fftnet_forward(params, tokens, cond, num_layer):
    """tokens: (B, T) int32, cond: (B, T, cond_dim) -> (B, T, io_ch).
    Matches FFTNet.forward with gen_mod=False; all blocks + fc fused in one
    pallas_call."""
    max_recep = 2 ** num_layer
    x_pad = jnp.pad(tokens, ((0, 0), (max_recep, 0)), constant_values=128)
    h0 = params["embedding"][x_pad]                      # (B, T + 2^L, C)
    # One max-padded cond: layer l's zero-padded cond == cond_max[sum(d[:l]):].
    cond_max = jnp.pad(cond, ((0, 0), (max_recep, 0), (0, 0)))
    dil = tuple(2 ** (num_layer - l - 1) for l in range(num_layer))
    blk = params["blocks"]
    stacked = dict(
        w0=jnp.stack([p["w0_lr"] for p in blk]),
        w1=jnp.stack([p["w1_lr"] for p in blk]),
        v0=jnp.stack([p["w0_vlr"] for p in blk]),
        v1=jnp.stack([p["w1_vlr"] for p in blk]),
        b=jnp.stack([p["b_lr"] + p["b_vlr"] for p in blk]),   # folded biases
        wl=jnp.stack([p["w_last"] for p in blk]),
        bl=jnp.stack([p["b_last"] for p in blk]))
    C = params["fc_w"].shape[1]
    out = _run_fft_stack(h0, cond_max, stacked, dil,
                         fc_w=_pad_last(params["fc_w"]),
                         fc_b=_pad_last(params["fc_b"]))
    return out[:, :, :C]


# -------------------------- params & references ----------------------------- #

def init_params(key, input_dim, cond_dim, num_layer, io_ch):
    keys = jax.random.split(key, num_layer + 2)
    params = {
        "embedding": jax.random.normal(keys[0], (input_dim, io_ch),
                                       jnp.float32) * 0.1,
        "blocks": [],
    }
    for l in range(num_layer):
        k = jax.random.split(keys[1 + l], 8)
        s_io = 1.0 / np.sqrt(2 * io_ch)
        s_c = 1.0 / np.sqrt(2 * cond_dim)
        s_1 = 1.0 / np.sqrt(io_ch)
        # Conv weights stored pre-transposed as (in_ch, out_ch) per tap.
        params["blocks"].append(dict(
            w0_lr=jax.random.normal(k[0], (io_ch, io_ch), jnp.float32) * s_io,
            w1_lr=jax.random.normal(k[1], (io_ch, io_ch), jnp.float32) * s_io,
            b_lr=jax.random.normal(k[2], (1, io_ch), jnp.float32) * 0.01,
            w0_vlr=jax.random.normal(k[3], (cond_dim, io_ch), jnp.float32) * s_c,
            w1_vlr=jax.random.normal(k[4], (cond_dim, io_ch), jnp.float32) * s_c,
            b_vlr=jax.random.normal(k[5], (1, io_ch), jnp.float32) * 0.01,
            w_last=jax.random.normal(k[6], (io_ch, io_ch), jnp.float32) * s_1,
            b_last=jax.random.normal(k[7], (1, io_ch), jnp.float32) * 0.01,
        ))
    kf = jax.random.split(keys[-1], 2)
    params["fc_w"] = jax.random.normal(kf[0], (io_ch, io_ch),
                                       jnp.float32) * (1.0 / np.sqrt(io_ch))
    params["fc_b"] = jax.random.normal(kf[1], (1, io_ch), jnp.float32) * 0.01
    return params


_HIGHEST = jax.lax.Precision.HIGHEST


def _refdot(a, b):
    return jnp.matmul(a, b, precision=_HIGHEST)


def fft_block_reference(x, cond, p, recep_sz):
    """Pure-JAX FFT_Block.forward (full-precision matmuls)."""
    d = recep_sz // 2
    L_out = x.shape[1] - d
    z = (_refdot(x[:, :L_out], p["w0_lr"])
         + _refdot(x[:, d:d + L_out], p["w1_lr"]) + p["b_lr"]
         + _refdot(cond[:, :L_out], p["w0_vlr"])
         + _refdot(cond[:, d:d + L_out], p["w1_vlr"]) + p["b_vlr"])
    z = jnp.maximum(z, 0.0)
    return jnp.maximum(_refdot(z, p["w_last"]) + p["b_last"], 0.0)


def fftnet_reference(params, tokens, cond, num_layer):
    """Pure-JAX reference for the fused stack, composed from the block ref."""
    max_recep = 2 ** num_layer
    x_pad = jnp.pad(tokens, ((0, 0), (max_recep, 0)), constant_values=128)
    h = params["embedding"][x_pad]
    for l in range(num_layer):
        zpad = max_recep // (2 ** l)
        recep = 2 ** (num_layer - l)              # dilation = recep // 2
        c = jnp.pad(cond, ((0, 0), (zpad, 0), (0, 0)))
        h = fft_block_reference(h, c, params["blocks"][l], recep)
    h = h[:, :-1, :]
    return _refdot(h, params["fc_w"]) + params["fc_b"]


# ----------------------------------- main ----------------------------------- #

if __name__ == "__main__":
    B, T = 2, 16
    input_dim = 256
    cond_dim = 8
    io_ch = 32
    num_layer = 3            # max receptive field = 2**3 = 8

    root = jax.random.PRNGKey(0)
    k_param, k_tok, k_cond, k_x = jax.random.split(root, 4)

    params = init_params(k_param, input_dim, cond_dim, num_layer, io_ch)
    tokens = jax.random.randint(k_tok, (B, T), 0, input_dim, dtype=jnp.int32)
    cond = jax.random.normal(k_cond, (B, T, cond_dim), jnp.float32)

    # (1) Single FFT_Block — the PyTorch module itself.
    recep_sz = 8
    x_blk = jax.random.normal(k_x, (B, T, io_ch), jnp.float32)
    blk_out = jax.block_until_ready(
        fft_block(x_blk, cond, params["blocks"][0], recep_sz))
    blk_ref = jax.block_until_ready(
        fft_block_reference(x_blk, cond, params["blocks"][0], recep_sz))
    assert blk_out.shape == (B, T - recep_sz // 2, io_ch), blk_out.shape
    np.testing.assert_allclose(np.asarray(blk_out), np.asarray(blk_ref),
                               rtol=1e-4, atol=1e-4)

    # (2) Full fused stack: num_layer FFT_Blocks + final 1x1, one pallas_call.
    out = jax.block_until_ready(fftnet_forward(params, tokens, cond, num_layer))
    ref = jax.block_until_ready(fftnet_reference(params, tokens, cond, num_layer))
    assert out.shape == (B, T, io_ch), out.shape
    assert bool(jnp.all(jnp.isfinite(out)))
    np.testing.assert_allclose(np.asarray(out), np.asarray(ref),
                               rtol=1e-4, atol=1e-4)
    print("KERNEL_OK")
</pallas_src>

<mosaic_0001>
module attributes {stable_mosaic.version = 11 : i64} {
  func.func @_fft_stack_kernel(%arg0: i32, %arg1: memref<1x16x32xf32, #tpu.memory_space<vmem>>, %arg2: memref<1x16x8xf32, #tpu.memory_space<vmem>>, %arg3: memref<1x32x32xf32, #tpu.memory_space<vmem>>, %arg4: memref<1x32x32xf32, #tpu.memory_space<vmem>>, %arg5: memref<1x8x32xf32, #tpu.memory_space<vmem>>, %arg6: memref<1x8x32xf32, #tpu.memory_space<vmem>>, %arg7: memref<1x1x32xf32, #tpu.memory_space<vmem>>, %arg8: memref<1x32x128xf32, #tpu.memory_space<vmem>>, %arg9: memref<1x1x128xf32, #tpu.memory_space<vmem>>, %arg10: memref<1x12x128xf32, #tpu.memory_space<vmem>>) attributes {dimension_semantics = [#tpu.dimension_semantics<parallel>], iteration_bounds = array<i64: 2>, scalar_prefetch = 0 : i64, scratch_operands = 0 : i64, tpu.core_type = #tpu.core_type<tc>, window_params = [{transform_indices = @transform_0, window_bounds = array<i64: 1, 16, 32>}, {transform_indices = @transform_1, window_bounds = array<i64: 1, 16, 8>}, {pipeline_mode = #tpu.pipeline_mode<synchronous>, transform_indices = @transform_2, window_bounds = array<i64: 1, 32, 32>}, {pipeline_mode = #tpu.pipeline_mode<synchronous>, transform_indices = @transform_3, window_bounds = array<i64: 1, 32, 32>}, {pipeline_mode = #tpu.pipeline_mode<synchronous>, transform_indices = @transform_4, window_bounds = array<i64: 1, 8, 32>}, {pipeline_mode = #tpu.pipeline_mode<synchronous>, transform_indices = @transform_5, window_bounds = array<i64: 1, 8, 32>}, {pipeline_mode = #tpu.pipeline_mode<synchronous>, transform_indices = @transform_6, window_bounds = array<i64: 1, 1, 32>}, {pipeline_mode = #tpu.pipeline_mode<synchronous>, transform_indices = @transform_7, window_bounds = array<i64: 1, 32, 128>}, {pipeline_mode = #tpu.pipeline_mode<synchronous>, transform_indices = @transform_8, window_bounds = array<i64: 1, 1, 128>}, {transform_indices = @transform_9, window_bounds = array<i64: 1, 12, 128>}]} {
    %c0 = arith.constant 0 : index
    %c0_0 = arith.constant 0 : index
    %c0_1 = arith.constant 0 : index
    %0 = vector.load %arg1[%c0, %c0_0, %c0_1] : memref<1x16x32xf32, #tpu.memory_space<vmem>>, vector<1x16x32xf32>
    %1 = vector.shape_cast %0 : vector<1x16x32xf32> to vector<16x32xf32>
    %c0_2 = arith.constant 0 : index
    %c0_3 = arith.constant 0 : index
    %c0_4 = arith.constant 0 : index
    %2 = vector.load %arg2[%c0_2, %c0_3, %c0_4] : memref<1x16x8xf32, #tpu.memory_space<vmem>>, vector<1x16x8xf32>
    %3 = vector.shape_cast %2 : vector<1x16x8xf32> to vector<16x8xf32>
    %4 = vector.extract_strided_slice %1 {offsets = [0, 0], sizes = [12, 32], strides = [1, 1]} : vector<16x32xf32> to vector<12x32xf32>
    %c0_5 = arith.constant 0 : index
    %c0_6 = arith.constant 0 : index
    %c0_7 = arith.constant 0 : index
    %5 = vector.load %arg3[%c0_5, %c0_6, %c0_7] : memref<1x32x32xf32, #tpu.memory_space<vmem>>, vector<1x32x32xf32>
    %6 = vector.shape_cast %5 : vector<1x32x32xf32> to vector<32x32xf32>
    %cst = arith.constant dense<0.000000e+00> : vector<12x32xf32>
    %7 = tpu.matmul %4, %6, %cst {dimension_numbers = #tpu.dot_dimension_numbers<[1], [0], [0], [1], [0, 0, 1, 1], [], []>} : vector<12x32xf32>, vector<32x32xf32>, vector<12x32xf32> -> vector<12x32xf32>
    %8 = vector.extract_strided_slice %1 {offsets = [4, 0], sizes = [12, 32], strides = [1, 1]} : vector<16x32xf32> to vector<12x32xf32>
    %c0_8 = arith.constant 0 : index
    %c0_9 = arith.constant 0 : index
    %c0_10 = arith.constant 0 : index
    %9 = vector.load %arg4[%c0_8, %c0_9, %c0_10] : memref<1x32x32xf32, #tpu.memory_space<vmem>>, vector<1x32x32xf32>
    %10 = vector.shape_cast %9 : vector<1x32x32xf32> to vector<32x32xf32>
    %cst_11 = arith.constant dense<0.000000e+00> : vector<12x32xf32>
    %11 = tpu.matmul %8, %10, %cst_11 {dimension_numbers = #tpu.dot_dimension_numbers<[1], [0], [0], [1], [0, 0, 1, 1], [], []>} : vector<12x32xf32>, vector<32x32xf32>, vector<12x32xf32> -> vector<12x32xf32>
    %12 = arith.addf %7, %11 : vector<12x32xf32>
    %13 = vector.extract_strided_slice %3 {offsets = [0, 0], sizes = [12, 8], strides = [1, 1]} : vector<16x8xf32> to vector<12x8xf32>
    %c0_12 = arith.constant 0 : index
    %c0_13 = arith.constant 0 : index
    %c0_14 = arith.constant 0 : index
    %14 = vector.load %arg5[%c0_12, %c0_13, %c0_14] : memref<1x8x32xf32, #tpu.memory_space<vmem>>, vector<1x8x32xf32>
    %15 = vector.shape_cast %14 : vector<1x8x32xf32> to vector<8x32xf32>
    %cst_15 = arith.constant dense<0.000000e+00> : vector<12x32xf32>
    %16 = tpu.matmul %13, %15, %cst_15 {dimension_numbers = #tpu.dot_dimension_numbers<[1], [0], [0], [1], [0, 0, 1, 1], [], []>} : vector<12x8xf32>, vector<8x32xf32>, vector<12x32xf32> -> vector<12x32xf32>
    %17 = arith.addf %12, %16 : vector<12x32xf32>
    %18 = vector.extract_strided_slice %3 {offsets = [4, 0], sizes = [12, 8], strides = [1, 1]} : vector<16x8xf32> to vector<12x8xf32>
    %c0_16 = arith.constant 0 : index
    %c0_17 = arith.constant 0 : index
    %c0_18 = arith.constant 0 : index
    %19 = vector.load %arg6[%c0_16, %c0_17, %c0_18] : memref<1x8x32xf32, #tpu.memory_space<vmem>>, vector<1x8x32xf32>
    %20 = vector.shape_cast %19 : vector<1x8x32xf32> to vector<8x32xf32>
    %cst_19 = arith.constant dense<0.000000e+00> : vector<12x32xf32>
    %21 = tpu.matmul %18, %20, %cst_19 {dimension_numbers = #tpu.dot_dimension_numbers<[1], [0], [0], [1], [0, 0, 1, 1], [], []>} : vector<12x8xf32>, vector<8x32xf32>, vector<12x32xf32> -> vector<12x32xf32>
    %22 = arith.addf %17, %21 : vector<12x32xf32>
    %c0_20 = arith.constant 0 : index
    %c0_21 = arith.constant 0 : index
    %c0_22 = arith.constant 0 : index
    %23 = vector.load %arg7[%c0_20, %c0_21, %c0_22] : memref<1x1x32xf32, #tpu.memory_space<vmem>>, vector<1x1x32xf32>
    %24 = vector.shape_cast %23 : vector<1x1x32xf32> to vector<1x32xf32>
    %25 = vector.broadcast %24 : vector<1x32xf32> to vector<12x32xf32>
    %26 = arith.addf %22, %25 : vector<12x32xf32>
    %cst_23 = arith.constant 0.000000e+00 : f32
    %27 = vector.broadcast %cst_23 : f32 to vector<12x32xf32>
    %28 = arith.maximumf %26, %27 : vector<12x32xf32>
    %c0_24 = arith.constant 0 : index
    %c0_25 = arith.constant 0 : index
    %c0_26 = arith.constant 0 : index
    %29 = vector.load %arg8[%c0_24, %c0_25, %c0_26] : memref<1x32x128xf32, #tpu.memory_space<vmem>>, vector<1x32x128xf32>
    %30 = vector.shape_cast %29 : vector<1x32x128xf32> to vector<32x128xf32>
    %cst_27 = arith.constant dense<0.000000e+00> : vector<12x128xf32>
    %31 = tpu.matmul %28, %30, %cst_27 {dimension_numbers = #tpu.dot_dimension_numbers<[1], [0], [0], [1], [0, 0, 1, 1], [], []>} : vector<12x32xf32>, vector<32x128xf32>, vector<12x128xf32> -> vector<12x128xf32>
    %c0_28 = arith.constant 0 : index
    %c0_29 = arith.constant 0 : index
    %c0_30 = arith.constant 0 : index
    %32 = vector.load %arg9[%c0_28, %c0_29, %c0_30] : memref<1x1x128xf32, #tpu.memory_space<vmem>>, vector<1x1x128xf32>
    %33 = vector.shape_cast %32 : vector<1x1x128xf32> to vector<1x128xf32>
    %34 = vector.broadcast %33 : vector<1x128xf32> to vector<12x128xf32>
    %35 = arith.addf %31, %34 : vector<12x128xf32>
    %cst_31 = arith.constant 0.000000e+00 : f32
    %36 = vector.broadcast %cst_31 : f32 to vector<12x128xf32>
    %37 = arith.maximumf %35, %36 : vector<12x128xf32>
    %c0_32 = arith.constant 0 : index
    %c0_33 = arith.constant 0 : index
    %c0_34 = arith.constant 0 : index
    %38 = vector.load %arg10[%c0_32, %c0_33, %c0_34] : memref<1x12x128xf32, #tpu.memory_space<vmem>>, vector<1x12x128xf32>
    %39 = vector.shape_cast %38 : vector<1x12x128xf32> to vector<12x128xf32>
    %40 = vector.shape_cast %37 : vector<12x128xf32> to vector<1x12x128xf32>
    tpu.vector_store %arg10[%c0_32, %c0_33, %c0_34], %40 {strides = array<i32>} : memref<1x12x128xf32, #tpu.memory_space<vmem>>, vector<1x12x128xf32>,
    return
  }
  func.func @transform_0(%arg0: i32) -> (i32, i32, i32) {
    %c0_i32 = arith.constant 0 : i32
    %c0_i32_0 = arith.constant 0 : i32
    %c0_i32_1 = arith.constant 0 : i32
    return %arg0, %c0_i32, %c0_i32_0 : i32, i32, i32
  }
  func.func @transform_1(%arg0: i32) -> (i32, i32, i32) {
    %c0_i32 = arith.constant 0 : i32
    %c0_i32_0 = arith.constant 0 : i32
    %c0_i32_1 = arith.constant 0 : i32
    return %arg0, %c0_i32, %c0_i32_0 : i32, i32, i32
  }
  func.func @transform_2(%arg0: i32) -> (i32, i32, i32) {
    %c0_i32 = arith.constant 0 : i32
    %c0_i32_0 = arith.constant 0 : i32
    %c0_i32_1 = arith.constant 0 : i32
    %c0_i32_2 = arith.constant 0 : i32
    return %c0_i32, %c0_i32_0, %c0_i32_1 : i32, i32, i32
  }
  func.func @transform_3(%arg0: i32) -> (i32, i32, i32) {
    %c0_i32 = arith.constant 0 : i32
    %c0_i32_0 = arith.constant 0 : i32
    %c0_i32_1 = arith.constant 0 : i32
    %c0_i32_2 = arith.constant 0 : i32
    return %c0_i32, %c0_i32_0, %c0_i32_1 : i32, i32, i32
  }
  func.func @transform_4(%arg0: i32) -> (i32, i32, i32) {
    %c0_i32 = arith.constant 0 : i32
    %c0_i32_0 = arith.constant 0 : i32
    %c0_i32_1 = arith.constant 0 : i32
    %c0_i32_2 = arith.constant 0 : i32
    return %c0_i32, %c0_i32_0, %c0_i32_1 : i32, i32, i32
  }
  func.func @transform_5(%arg0: i32) -> (i32, i32, i32) {
    %c0_i32 = arith.constant 0 : i32
    %c0_i32_0 = arith.constant 0 : i32
    %c0_i32_1 = arith.constant 0 : i32
    %c0_i32_2 = arith.constant 0 : i32
    return %c0_i32, %c0_i32_0, %c0_i32_1 : i32, i32, i32
  }
  func.func @transform_6(%arg0: i32) -> (i32, i32, i32) {
    %c0_i32 = arith.constant 0 : i32
    %c0_i32_0 = arith.constant 0 : i32
    %c0_i32_1 = arith.constant 0 : i32
    %c0_i32_2 = arith.constant 0 : i32
    return %c0_i32, %c0_i32_0, %c0_i32_1 : i32, i32, i32
  }
  func.func @transform_7(%arg0: i32) -> (i32, i32, i32) {
    %c0_i32 = arith.constant 0 : i32
    %c0_i32_0 = arith.constant 0 : i32
    %c0_i32_1 = arith.constant 0 : i32
    %c0_i32_2 = arith.constant 0 : i32
    return %c0_i32, %c0_i32_0, %c0_i32_1 : i32, i32, i32
  }
  func.func @transform_8(%arg0: i32) -> (i32, i32, i32) {
    %c0_i32 = arith.constant 0 : i32
    %c0_i32_0 = arith.constant 0 : i32
    %c0_i32_1 = arith.constant 0 : i32
    %c0_i32_2 = arith.constant 0 : i32
    return %c0_i32, %c0_i32_0, %c0_i32_1 : i32, i32, i32
  }
  func.func @transform_9(%arg0: i32) -> (i32, i32, i32) {
    %c0_i32 = arith.constant 0 : i32
    %c0_i32_0 = arith.constant 0 : i32
    %c0_i32_1 = arith.constant 0 : i32
    return %arg0, %c0_i32, %c0_i32_0 : i32, i32, i32
  }
}

</mosaic_0001>

<bundles_post_ra>
// kernel: tpu_custom_call.1
= control target key start
LH: loop header
LB: loop body
LE: loop exit
PB: predicated region body
PF: predicated region fallthrough
CT: control target
= control target key end

     0   :  { %14 = vsyncpa [#allocation3], 0  ;;  %s1526_s0 = inlined_call_operand.vmem [shape: f32[2,16,32], index: 0, kind: input, shape index: {}]   ;;  %s1527_s1 = inlined_call_operand.vmem [shape: f32[2,16,8], index: 1, kind: input, shape index: {}]   ;;  %s1528_s2 = inlined_call_operand.hbm [shape: f32[1,32,32], index: 2, kind: input, shape index: {}]   ;;  %s1529_s3 = inlined_call_operand.hbm [shape: f32[1,32,32], index: 3, kind: input, shape index: {}]   ;;  %s1530_s4 = inlined_call_operand.hbm [shape: f32[1,8,32], index: 4, kind: input, shape index: {}]   ;;  %s1531_s5 = inlined_call_operand.hbm [shape: f32[1,8,32], index: 5, kind: input, shape index: {}]   ;;  %s1532_s6 = inlined_call_operand.vmem [shape: f32[1,1,32], index: 6, kind: input, shape index: {}]   ;;  %s1533_s7 = inlined_call_operand.vmem [shape: f32[1,32,128], index: 7, kind: input, shape index: {}]   ;;  %s1534_s8 = inlined_call_operand.vmem [shape: f32[1,1,128], index: 8, kind: input, shape index: {}]   ;;  %s1535_s9 = inlined_call_operand.vmem [shape: f32[2,12,128], index: 9, kind: output, shape index: {}]  }
   0x1   :  { %15 = vsyncpa [#allocation5], 0 }
   0x2   :  { %16 = vsyncpa [#allocation8], 0  ;;  %s1342_s30 = smov 0  }
   0x3 LB: > { %s1348_s10 = sadd.s32 4294967295, %s1284_s30   ;;  %p972_p0 = scmp.ge.s32.totalorder %s1284_s30, 1  ;;  %s1284_s30 = sphi %s1342_s30, %s22_s30  }
   0x4   : > { %p252_p1 = scmp.lt.s32.totalorder %s1284_s30, 3  ;;  %p1536_p2 = scmp.eq.s32.totalorder %s1348_s10, 0 }
   0x5   : > { %s1286_s12 = smov [#allocation4]   ;;  %s1287_s14 = smov [#allocation2]  }
   0x6   : > { %p1353_p3 = pnand %p972_p0, %p252_p1  ;;  %s277_s13 = sshll.u32 %s1286_s12, 4  ;;  %s1357_s13 = int_to_ptr.vmem [resolvable:$true] %s277_s13 }
   0x7   : > { %s264_s15 = sshll.u32 %s1287_s14, 4  ;;  %s1288_s17 = smov [#allocation6]   ;;  %s1361_s15 = int_to_ptr.vmem [resolvable:$true] %s264_s15 }
   0x8   : > { %s1538_s11 = scalar_select %p1353_p3, 1, 0 }
   0x9   : > { %p1119_p4 = pneg %p1353_p3  ;;  %s291_s18 = sshll.u32 %s1288_s17, 4  ;;  %s1369_s18 = int_to_ptr.vmem [resolvable:$true] %s291_s18 }
   0xa   : > { %s1289_s19 = smov [#allocation7]   ;;  %s1154_s23 = scalar_lea.hbm %s1529_s3, 512 }
   0xb   : > { %p1365_p5 = pnand %p1536_p2, %p1119_p4  ;;  %s1371_s20 = sshll.u32 %s1289_s19, 4  ;;  %s303_s20 = int_to_ptr.vmem [resolvable:$true] %s1371_s20 }
   0xc   : > { %p1155_p6 = scmp.ne.s32.totalorder %s1529_s3, %s1154_s23  ;;  %p1161_p10 = scmp.lt.u32.totalorder %s1154_s23, %s1529_s3 }
   0xd   : > { %p1381_p7 = pneg %p1365_p5 }
   0xf   : > { %p1157_p8 = pnand %p1381_p7, %p1155_p6 }
  0x11   : > { %p1158_p9 = pneg %p1157_p8 }
  0x13   : > { %p1163_p11 = pnand %p1161_p10, %p1158_p9 }
  0x15   : > { %1166 = shalt.err (!%p1163_p11)
}
  0x16   : > { %s1167_s29 = scalar_lea.vmem %s1357_s13, 512  ;;  %p1175_p1 = scmp.lt.s32.totalorder %s1357_s13, %s1357_s13 }
  0x17   : > { %p1168_p12 = scmp.ne.s32.totalorder %s1357_s13, %s1167_s29  ;;  %p1176_p4 = scmp.lt.s32.totalorder %s1167_s29, %s1167_s29 }
  0x19   : > { %p1170_p13 = pnand %p1168_p12, %p1381_p7  ;;  %p1177_p6 = por %p1176_p4, %p1175_p1 }
  0x1b   : > { %p1171_p0 = pneg %p1170_p13 }
  0x1d   : > { %p1178_p8 = pnand %p1177_p6, %p1171_p0 }
  0x1f   : > { %1181 = shalt.err (!%p1178_p8)
}
  0x20   : > { %s1290_s12 = smov 128   ;;  %s1291_s14 = smov 8  }
  0x21   : > { %1125 = dma.hbm_to_vmem [thread:$0]  (!%p1365_p5), %s1529_s3, 512, %s1357_s13, [#allocation5], %s1290_s12, %s1290_s12, %s1291_s14  }
  0x22   : > { %s1182_s23 = scalar_lea.hbm %s1528_s2, 512 }
  0x23   : > { %p1183_p9 = scmp.ne.s32.totalorder %s1528_s2, %s1182_s23  ;;  %p1189_p12 = scmp.lt.u32.totalorder %s1182_s23, %s1528_s2 }
  0x25   : > { %p1185_p10 = pnand %p1183_p9, %p1381_p7 }
  0x27   : > { %p1186_p11 = pneg %p1185_p10 }
  0x29   : > { %p1191_p13 = pnand %p1189_p12, %p1186_p11 }
  0x2b   : > { %1194 = shalt.err (!%p1191_p13)
}
  0x2c   : > { %s1195_s13 = scalar_lea.vmem %s1361_s15, 512  ;;  %p1203_p6 = scmp.lt.s32.totalorder %s1361_s15, %s1361_s15 }
  0x2d   : > { %p1196_p0 = scmp.ne.s32.totalorder %s1361_s15, %s1195_s13  ;;  %p1204_p8 = scmp.lt.s32.totalorder %s1195_s13, %s1195_s13 }
  0x2f   : > { %p1198_p1 = pnand %p1196_p0, %p1381_p7  ;;  %p1205_p9 = por %p1204_p8, %p1203_p6 }
  0x31   : > { %p1199_p4 = pneg %p1198_p1 }
  0x33   : > { %p1206_p10 = pnand %p1205_p9, %p1199_p4 }
  0x35   : > { %1209 = shalt.err (!%p1206_p10)
}
  0x36   : > { %1122 = dma.hbm_to_vmem [thread:$0]  (!%p1365_p5), %s1528_s2, 512, %s1361_s15, [#allocation3], %s1290_s12, %s1290_s12, %s1291_s14  }
  0x37   : > { %s1210_s22 = scalar_lea.hbm %s1530_s4, 128 }
  0x38   : > { %p1211_p11 = scmp.ne.s32.totalorder %s1530_s4, %s1210_s22  ;;  %p1217_p0 = scmp.lt.u32.totalorder %s1210_s22, %s1530_s4 }
  0x3a   : > { %p1213_p12 = pnand %p1211_p11, %p1381_p7 }
  0x3c   : > { %p1214_p13 = pneg %p1213_p12 }
  0x3e   : > { %p1219_p1 = pnand %p1217_p0, %p1214_p13 }
  0x40   : > { %1222 = shalt.err (!%p1219_p1)
}
  0x41   : > { %s1223_s15 = scalar_lea.vmem %s1369_s18, 128  ;;  %p1231_p9 = scmp.lt.s32.totalorder %s1369_s18, %s1369_s18 }
  0x42   : > { %p1224_p4 = scmp.ne.s32.totalorder %s1369_s18, %s1223_s15  ;;  %p1232_p10 = scmp.lt.s32.totalorder %s1223_s15, %s1223_s15 }
  0x44   : > { %p1226_p6 = pnand %p1224_p4, %p1381_p7  ;;  %p1233_p11 = por %p1232_p10, %p1231_p9 }
  0x46   : > { %p1227_p8 = pneg %p1226_p6 }
  0x48   : > { %p1234_p12 = pnand %p1233_p11, %p1227_p8 }
  0x4a   : > { %1237 = shalt.err (!%p1234_p12)
}
  0x4b   : > { %1128 = dma.hbm_to_vmem [thread:$0]  (!%p1365_p5), %s1530_s4, 128, %s1369_s18, [#allocation5]  }
  0x4c   : > { %s1238_s29 = scalar_lea.hbm %s1531_s5, 128 }
  0x4d   : > { %p1239_p13 = scmp.ne.s32.totalorder %s1531_s5, %s1238_s29  ;;  %p1245_p4 = scmp.lt.u32.totalorder %s1238_s29, %s1531_s5 }
  0x4f   : > { %p1241_p0 = pnand %p1239_p13, %p1381_p7 }
  0x51   : > { %p1242_p1 = pneg %p1241_p0 }
  0x53   : > { %p1247_p6 = pnand %p1245_p4, %p1242_p1 }
  0x55   : > { %1250 = shalt.err (!%p1247_p6)
}
  0x56   : > { %s1251_s23 = scalar_lea.vmem %s303_s20, 128  ;;  %p1259_p11 = scmp.lt.s32.totalorder %s303_s20, %s303_s20 }
  0x57   : > { %p1252_p8 = scmp.ne.s32.totalorder %s303_s20, %s1251_s23  ;;  %p1260_p12 = scmp.lt.s32.totalorder %s1251_s23, %s1251_s23 }
  0x59   : > { %p1254_p9 = pnand %p1252_p8, %p1381_p7  ;;  %p1261_p2 = por %p1260_p12, %p1259_p11 }
  0x5b   : > { %p1255_p10 = pneg %p1254_p9 }
  0x5d   : > { %p1262_p3 = pnand %p1261_p2, %p1255_p10 }
  0x5f   : > { %1265 = shalt.err (!%p1262_p3)
}
  0x60   : > { %1131 = dma.hbm_to_vmem [thread:$0]  (!%p1365_p5), %s1531_s5, 128, %s303_s20, [#allocation8]  }
  0x61   : > { %p1541_p13 = scmp.ne.s32.totalorder %s1538_s11, 0 }
  0x62   : > { %p1542_p0 = scmp.eq.s32.totalorder (!%p1541_p13), %s1348_s10, 0 }
  0x63   : > { %340 = sbr.rel (%p1541_p13) target bundleno = 578 (0x242), region = 56 }
  0x6a   : > { %1271 = dma.done.wait (%p1542_p0), [#allocation3], 512   ;;  %p1543_p7 = pmov %p1542_p0 }
  0x6b   : > { %p1544_p1 = pmov %p1542_p0 }
  0x6c   : > { %1273 = vsyncadd (%p1543_p7), [#allocation3], 4294966784 }
  0x6d   : > { %1275 = dma.done.wait (%p1544_p1), [#allocation5], 640   ;;  %p1545_p2 = pmov %p1542_p0 }
  0x6e   : > { %p1546_p3 = pmov %p1542_p0 }
  0x6f   : > { %1277 = vsyncadd (%p1545_p2), [#allocation5], 4294966656 }
  0x70   : > { %1279 = dma.done.wait (%p1546_p3), [#allocation8], 128   ;;  %p1547_p5 = pmov %p1542_p0 }
  0x71   : > { %p393_p4 = scmp.lt.s32.totalorder %s1348_s10, 1  ;;  %vm426_vm0 = vcmask 261120   ;;  %v412_v0 = vld [vmem:[#allocation2] sm:$0xff]  ;;  %v413_v1 = vld [vmem:[#allocation2 + $0x8] sm:$0xff]  ;;  %v414_v2 = vld [vmem:[#allocation2 + $0x10] sm:$0xff]  ;;  %vm422_vm1 = vcmask 1043456  }
  0x72   : > { %1281 = vsyncadd (%p1547_p5), [#allocation8], 4294967168  ;;  %v1081_v3 = vpack.c.bf16 %v413_v1, %v412_v0  ;;  %v415_v4 = vld [vmem:[#allocation2 + $0x18] sm:$0xff]  ;;  %v416_v10 = vld [vmem:[#allocation4] sm:$0xff]  ;;  %vm586_vm2 = vcmask 64512  }
  0x73   : > { %s1549_s10 = smov (!%p393_p4, %s1348_s10), 1  ;;  %v1085_v7 = vpack.c.bf16 %v415_v4, %v414_v2  ;;  %v417_v11 = vld [vmem:[#allocation4 + $0x8] sm:$0xff]  ;;  %v418_v13 = vld [vmem:[#allocation4 + $0x10] sm:$0xff]  ;;  %v419_v14 = vld [vmem:[#allocation4 + $0x18] sm:$0xff] }
  0x74   : > { %s1483_s11 = sshll.u32 %s1549_s10, 4  ;;  %1082 = vmatprep.subr.bf16.mxu0 %v1081_v3  ;;  %v1073_v12 = vpack.c.bf16 %v417_v11, %v416_v10  ;;  %v1077_v16 = vpack.c.bf16 %v419_v14, %v418_v13  ;;  %v585_v17 = vld [vmem:[#allocation6] sm:$0xff]  ;;  %v670_v19 = vld [vmem:[#allocation7] sm:$0xff]  ;;  %v768_v27 = vld [vmem:[%s1533_s7 + $0x10] sm:$0xff] }
  0x75   : > { %s397_s26 = scalar_lea.vmem %s1526_s0, %s1483_s11  ;;  %1084 = vmatpush3.bf16.msra.mxu0 %v1081_v3  ;;  %s402_s27 = scalar_lea.vmem %s1527_s1, %s1483_s11  ;;  %v766_v24 = vld [vmem:[%s1533_s7] sm:$0xff]  ;;  %v767_v25 = vld [vmem:[%s1533_s7 + $0x8] sm:$0xff]  ;;  %v769_v28 = vld [vmem:[%s1533_s7 + $0x18] sm:$0xff] }
  0x76   : > { %v408_v5 = vld [vmem:[%s397_s26] sm:$0xff]  ;;  %v409_v6 = vld [vmem:[%s397_s26 + $0x8] sm:$0xff]  ;;  %1086 = vmatprep.subr.bf16.mxu0 %v1085_v7  ;;  %1074 = vmatprep.subr.bf16.mxu1 %v1073_v12  ;;  %v1089_v26 = vpack.c.bf16 %v767_v25, %v766_v24  ;;  %v1093_v29 = vpack.c.bf16 %v769_v28, %v768_v27  ;;  %s407_s20 = scalar_lea.vmem %s1535_s9, %s1483_s11 }
  0x77   : > { %v423_v8 = vrot.slane %v408_v5, 4  ;;  %v424_v9 = vrot.slane %v409_v6, 4  ;;  %1049 = vmatprep.mubr.msk.f32.mxu0 %vm426_vm0, %v408_v5  ;;  %1076 = vmatpush3.bf16.msra.mxu1 %v1073_v12  ;;  %v410_v18 = vld [vmem:[%s402_s27] sm:$0xff]  ;;  %v411_v20 = vld [vmem:[%s402_s27 + $0x8] sm:$0xff] }
  0x78   : > { %1078 = vmatprep.subr.bf16.mxu1 %v1077_v16  ;;  %v671_v21 = vrot.slane %v410_v18, 4  ;;  %v672_v22 = vrot.slane %v411_v20, 4  ;;  %v997_v33 = vld [vmem:[%s1532_s6] ss:$0 sm:$0xff] }
  0x79   : > { %v425_v15 = vsel %vm422_vm1, %v423_v8, %v424_v9  ;;  %1088 = vmatpush3.bf16.msra.mxu0 %v1085_v7  ;;  %v998_v41 = vld [vmem:[%s1534_s8] ss:$0 sm:$0xff] }
  0x7a   : > { %1038 = vmatprep.mubr.msk.f32.mxu1 %vm426_vm0, %v425_v15  ;;  %1052 = vmatprep.subr.mxu0 %v585_v17  ;;  %v673_v23 = vsel %vm422_vm1, %v671_v21, %v672_v22 }
  0x7b   : > { %1080 = vmatpush3.bf16.msra.mxu1 %v1077_v16 }
  0x7c   : > { %1050 = vmatmul.mubr.msk.f32.vlgmr.msra.gmra.mrb[0].mxu0 %vm426_vm0, %v409_v6  ;;  %1090 = vmatprep.subr.bf16.mxu1 %v1089_v26 }
  0x7d   : > { %1053 = vmatpush3.msra.mxu0 %v585_v17  ;;  %1054 = vmatprep.mubr.msk.f32.mxu0 %vm586_vm2, %v410_v18 }
  0x7e   : > { %1057 = vmatprep.subr.mxu0 %v670_v19  ;;  %1039 = vmatmul.mubr.msk.f32.vlgmr.msra.gmra.mrb[0].mxu1 %vm426_vm0, %v424_v9 }
  0x7f   : > { %1092 = vmatpush3.bf16.msra.mxu1 %v1089_v26 }
  0x80   : > { %1094 = vmatprep.subr.bf16.mxu1 %v1093_v29 }
  0x83   : > { %1096 = vmatpush3.bf16.msra.mxu1 %v1093_v29 }
  0x84   : > { %1055 = vmatmul.mubr.msk.f32.vlgmr.msra.gmra.mrb[0].mxu0 %vm586_vm2, %v411_v20 }
  0x85   : > { %1058 = vmatpush3.msra.mxu0 %v670_v19  ;;  %1059 = vmatprep.mubr.msk.f32.mxu0 %vm586_vm2, %v673_v23 }
  0x8c   : > { %1060 = vmatmul.mubr.msk.f32.vlgmr.msra.gmra.mrb[0].mxu0 %vm586_vm2, %v672_v22 }
 0x151   : > { %v1040_v30 = vpop.f32.mrb[0].mxu1 }
 0x152   : > { %v497_v31 = vpop.f32.mrb[1].mxu1 }
 0x15f   : > { %v1061_v32 = vpop.f32.mrb[0].mxu0 }
 0x160   : > { %v1097_v34 = vadd.f32 %v1061_v32, %v1040_v30  ;;  %v744_v35 = vpop.f32.mrb[1].mxu0 }
 0x161   : > { %v1098_v36 = vadd.f32 %v744_v35, %v497_v31 }
 0x162   : > { %v763_v37 = vadd.f32 %v1097_v34, %v997_v33 }
 0x163   : > { %v762_v38 = vadd.f32 %v1098_v36, %v997_v33 }
 0x164   : > { %v765_v40 = vmax.f32 %v763_v37, 0.0 }
 0x165   : > { %v764_v39 = vmax.f32 %v762_v38, 0.0 }
 0x167   : > { %1070 = vmatprep.mubr.msk.f32.mxu1 %vm426_vm0, %v764_v39 }
 0x168   : > { %1071 = vmatmul.mubr.msk.f32.vlgmr.msra.gmra.mrb[2].mxu1 %vm426_vm0, %v765_v40 }
 0x23b   : > { %v1072_v42 = vpop.f32.mrb[2].mxu1 }
 0x23c   : > { %v855_v43 = vadd.f32 %v1072_v42, %v998_v41  ;;  %v849_v44 = vpop.f32.mrb[3].mxu1 }
 0x23d   : > { %v850_v45 = vadd.f32 %v998_v41, %v849_v44 }
 0x23e   : > { %v859_v46 = vmax.f32 %v855_v43, 0.0 }
 0x23f   : > { %v858_v47 = vmax.f32 %v850_v45, 0.0 }
 0x240   : > { %861 = vst [vmem:[%s407_s20 + $0x8] sm:$0xf] %v859_v46 }
 0x241   : > { %860 = vst [vmem:[%s407_s20] sm:$0xff] %v858_v47 }
 0x242 PF: > { %s22_s30 = sadd.s32 1, %s1284_s30  }
 0x243   : > { %p19_p6 = scmp.ge.s32.totalorder %s22_s30, 4  }
 0x245   :  { %21 = sbr.rel (!%p19_p6) target bundleno = 3 (0x3), region = 106 }
 0x24c   :  { %883 = vsyncpa [#allocation3], 1 }
 0x24d   :  { %885 = vsyncpa [#allocation3 + $0x1], 1 }
 0x24e   :  { %886 = vsyncpa [#allocation5], 1 }
 0x24f   :  { %887 = vsyncpa [#allocation8], 1 }

</bundles_post_ra>
